<compile_context>
chip_gen: v6e
topology: v6e:2x2x1
jax: 0.10.0
libtpu: 0.0.40
codegen_flags: <defaults>
</compile_context>

<pallas_src>
import functools
import math

import jax
import jax.numpy as jnp
from jax.experimental import pallas as pl
from jax.experimental.pallas import tpu as pltpu


_FOLD_MAX_WIDTH = 512     # cap on folded row width k*C (bounds seg-matrix size and MXU work/elem)
_FOLD_MAX_DENSE_C = 256   # when C is already a multiple of 128, MXU-reduce only pays up to here


def _round_up(x, m):
    return (x + m - 1) // m * m


@functools.lru_cache(maxsize=None)
def _budgets():
    """(target_block_bytes, vmem_limit_bytes), sized per TPU generation."""
    vmem_cap = 64 * 1024 * 1024                     # conservative default (v7x per-TC VMEM)
    try:
        info = pltpu.get_tpu_info()
        cap = getattr(info, "vmem_capacity_bytes", None)
        if cap:
            vmem_cap = int(cap)
    except Exception:
        pass
    # Leave ~1/4 of VMEM to the compiler; never exceed 100 MiB.
    vmem_limit = min(100 * 1024 * 1024, max(32 * 1024 * 1024, vmem_cap * 3 // 4))
    # Budget: 2 double-buffered input blocks + 2 output blocks + ~3x block of
    # f32 intermediates (x, xc, y live simultaneously) + margin  ->  ~12 blocks.
    target_block = min(8 * 1024 * 1024, max(2 * 1024 * 1024, vmem_limit // 12))
    return target_block, vmem_limit


def _compiler_params(n_parallel_axes, vmem_limit):
    return pltpu.CompilerParams(
        dimension_semantics=("parallel",) * n_parallel_axes,
        vmem_limit_bytes=int(vmem_limit))


def _pick_row_tile(n, row_width, itemsize, target_bytes, min_steps=2):
    """Rows per block for an (N, row_width) array (rows live on sublanes)."""
    granule = 8 * max(1, 4 // itemsize)             # 8 f32 / 16 bf16 / 32 int8 sublanes
    row_bytes = _round_up(row_width, 128) * itemsize
    tr = max(granule, target_bytes // row_bytes // granule * granule)
    steps = pl.cdiv(n, tr)
    if n > granule and min_steps > 1:
        steps = max(steps, min_steps)               # keep both v7x TensorCores busy
        steps += steps % 2                          # prefer an even split across 2 TCs
    tr = _round_up(pl.cdiv(n, steps), granule)
    return min(tr, _round_up(n, granule))


def _pick_lane_tile(l, c, itemsize, target_bytes, min_steps=2):
    """Lane-axis tile for a (C, L) block (channels_first)."""
    col_bytes = _round_up(c, 8) * itemsize
    tl = max(128, target_bytes // col_bytes // 128 * 128)
    steps = pl.cdiv(l, tl)
    if l > 128 and min_steps > 1:
        steps = max(steps, min_steps)
        steps += steps % 2
    tl = _round_up(pl.cdiv(l, steps), 128)
    return min(tl, _round_up(l, 128))


# --------------------------------------------------------------------------
# Kernels
# --------------------------------------------------------------------------

def _ln_lastdim_kernel(x_ref, w_ref, b_ref, o_ref, *, eps):
    # General channels_last path: (TR, C) tile, normalize over the lane axis.
    x = x_ref[...].astype(jnp.float32)
    u = jnp.mean(x, axis=-1, keepdims=True)
    xc = x - u
    var = jnp.mean(xc * xc, axis=-1, keepdims=True)          # biased variance
    inv = jax.lax.rsqrt(var + eps)
    y = xc * inv * w_ref[...].astype(jnp.float32) + b_ref[...].astype(jnp.float32)
    o_ref[...] = y.astype(o_ref.dtype)


def _ln_sublane_kernel(x_ref, w_ref, b_ref, o_ref, *, eps):
    # channels_first: (C, TL) tile; normalize over C (sublanes).  The flattened
    # spatial axis stays on lanes, so no NCHW<->NHWC transposes and lane-dense IO.
    x = x_ref[...].astype(jnp.float32)
    u = jnp.mean(x, axis=0, keepdims=True)
    xc = x - u
    var = jnp.mean(xc * xc, axis=0, keepdims=True)
    inv = jax.lax.rsqrt(var + eps)
    y = xc * inv * w_ref[...].astype(jnp.float32) + b_ref[...].astype(jnp.float32)
    o_ref[...] = y.astype(o_ref.dtype)


def _mxu_segmented_sum(a_f32, seg_bf16):
    # a @ seg with ~f32 accuracy on bf16 MXU passes: split `a` into an exactly
    # representable bf16 hi part plus the small residual.  `seg` is a 0/1
    # indicator matrix (exact in bf16), so both passes multiply exact operands.
    a_hi = a_f32.astype(jnp.bfloat16)
    a_lo = (a_f32 - a_hi.astype(jnp.float32)).astype(jnp.bfloat16)
    return (jnp.dot(a_hi, seg_bf16, preferred_element_type=jnp.float32)
            + jnp.dot(a_lo, seg_bf16, preferred_element_type=jnp.float32))


def _ln_folded_kernel(x_ref, w_ref, b_ref, seg_ref, o_ref, *, eps, inv_c):
    # Lane-dense path: each (TR, FW) row holds k = FW//C independent groups of C
    # channels.  Segmented mean/variance are block-diagonal matmuls on the
    # otherwise-idle MXU; `seg` is grid-invariant (constant index_map => DMA'd
    # once), keeping the steady-state loop free of the iota/select setup work.
    x = x_ref[...].astype(jnp.float32)
    seg = seg_ref[...]
    mean = _mxu_segmented_sum(x, seg) * inv_c                # per-group mean on every lane
    xc = x - mean
    var = _mxu_segmented_sum(xc * xc, seg) * inv_c           # per-group biased variance
    inv = jax.lax.rsqrt(var + eps)
    y = xc * inv * w_ref[...].astype(jnp.float32) + b_ref[...].astype(jnp.float32)
    o_ref[...] = y.astype(o_ref.dtype)


# --------------------------------------------------------------------------
# Wrappers
# --------------------------------------------------------------------------

def _rows_general(x2d, weight, bias, eps):
    n, c = x2d.shape
    target_block, vmem_limit = _budgets()
    itemsize = jnp.dtype(x2d.dtype).itemsize
    # TODO(synk): for very large C (where a (granule, C) f32 block plus ~3x
    # intermediates exceeds the VMEM limit, i.e. C of a few hundred thousand)
    # add an "arbitrary" grid axis over C chunks with (sum, sum_sq) scratch
    # accumulators and pl.when init/finalize.
    tr = _pick_row_tile(n, c, itemsize, target_block)
    return pl.pallas_call(
        functools.partial(_ln_lastdim_kernel, eps=eps),
        out_shape=jax.ShapeDtypeStruct((n, c), x2d.dtype),
        grid_spec=pltpu.PrefetchScalarGridSpec(
            num_scalar_prefetch=0,
            grid=(pl.cdiv(n, tr),),
            in_specs=[
                pl.BlockSpec((tr, c), lambda i: (i, 0)),
                pl.BlockSpec((1, c), lambda i: (0, 0)),
                pl.BlockSpec((1, c), lambda i: (0, 0)),
            ],
            out_specs=pl.BlockSpec((tr, c), lambda i: (i, 0)),
        ),
        compiler_params=_compiler_params(1, vmem_limit),
    )(x2d, weight.reshape(1, c), bias.reshape(1, c))


def _rows_folded(x2d, weight, bias, eps, k):
    n, c = x2d.shape
    target_block, vmem_limit = _budgets()
    itemsize = jnp.dtype(x2d.dtype).itemsize
    fw = k * c
    nf = n // k
    xf = x2d.reshape(nf, fw) if k > 1 else x2d               # free: contiguous reshape
    wf = jnp.tile(weight.reshape(-1), k).reshape(1, fw)
    bf = jnp.tile(bias.reshape(-1), k).reshape(1, fw)
    grp = jnp.arange(fw, dtype=jnp.int32) // c
    seg = (grp[:, None] == grp[None, :]).astype(jnp.bfloat16)   # 0/1 block-diagonal, exact bf16
    tr = _pick_row_tile(nf, fw, itemsize, target_block)
    y = pl.pallas_call(
        functools.partial(_ln_folded_kernel, eps=eps, inv_c=1.0 / c),
        out_shape=jax.ShapeDtypeStruct((nf, fw), x2d.dtype),
        grid_spec=pltpu.PrefetchScalarGridSpec(
            num_scalar_prefetch=0,
            grid=(pl.cdiv(nf, tr),),
            in_specs=[
                pl.BlockSpec((tr, fw), lambda i: (i, 0)),
                pl.BlockSpec((1, fw), lambda i: (0, 0)),
                pl.BlockSpec((1, fw), lambda i: (0, 0)),
                pl.BlockSpec((fw, fw), lambda i: (0, 0)),    # grid-invariant: fetched once
            ],
            out_specs=pl.BlockSpec((tr, fw), lambda i: (i, 0)),
        ),
        compiler_params=_compiler_params(1, vmem_limit),
    )(xf, wf, bf, seg)
    return y.reshape(n, c) if k > 1 else y


def _layer_norm_rows(x2d, weight, bias, eps):
    """LayerNorm over the last dim of a (N, C) array."""
    n, c = x2d.shape
    k = 128 // math.gcd(c, 128)
    fw = k * c
    if c % 128 == 0:
        use_folded = c <= _FOLD_MAX_DENSE_C                  # MXU segmented reduce, k == 1
    else:
        use_folded = fw <= _FOLD_MAX_WIDTH                   # lane-dense fold
    use_folded = use_folded and n >= k

    if not use_folded:
        return _rows_general(x2d, weight, bias, eps)
    if n % k == 0:
        return _rows_folded(x2d, weight, bias, eps, k)
    # Remainder handling: keep the bulk lane-dense, run the (<k)-row tail on
    # the general kernel, then stitch the results back together.
    n_main = (n // k) * k
    y_main = _rows_folded(x2d[:n_main], weight, bias, eps, k)
    y_tail = _rows_general(x2d[n_main:], weight, bias, eps)
    return jnp.concatenate([y_main, y_tail], axis=0)


def _layer_norm_channels_first(x, weight, bias, eps):
    """(B, C, *spatial): normalize over C with no layout transposes."""
    target_block, vmem_limit = _budgets()
    b = x.shape[0]
    c = x.shape[1]
    l = 1
    for d in x.shape[2:]:
        l *= d
    x3 = x.reshape(b, c, l)                                  # free: contiguous reshape
    min_steps = 1 if b >= 2 else 2                           # batch axis already feeds both TCs
    tl = _pick_lane_tile(l, c, jnp.dtype(x.dtype).itemsize, target_block, min_steps)
    y = pl.pallas_call(
        functools.partial(_ln_sublane_kernel, eps=eps),
        out_shape=jax.ShapeDtypeStruct((b, c, l), x.dtype),
        grid_spec=pltpu.PrefetchScalarGridSpec(
            num_scalar_prefetch=0,
            grid=(b, pl.cdiv(l, tl)),
            in_specs=[
                pl.BlockSpec((None, c, tl), lambda i, j: (i, 0, j)),
                pl.BlockSpec((c, 1), lambda i, j: (0, 0)),
                pl.BlockSpec((c, 1), lambda i, j: (0, 0)),
            ],
            out_specs=pl.BlockSpec((None, c, tl), lambda i, j: (i, 0, j)),
        ),
        compiler_params=_compiler_params(2, vmem_limit),
    )(x3, weight.reshape(c, 1), bias.reshape(c, 1))
    return y.reshape(x.shape)


def layer_norm(x, weight, bias, eps=1e-5, data_format="channels_last"):
    """Matches the PyTorch LayerNorm module's forward.

    channels_last : x is (..., C), normalize over C.
    channels_first: x is (B, C, *spatial), normalize over C (dim 1).
    """
    if data_format == "channels_last":
        c = x.shape[-1]
        lead = x.shape[:-1]
        y = _layer_norm_rows(x.reshape(-1, c), weight, bias, float(eps))
        return y.reshape(*lead, c)
    if data_format == "channels_first":
        return _layer_norm_channels_first(x, weight, bias, float(eps))
    raise NotImplementedError(data_format)


# --------------------------------------------------------------------------
# Reference + self-test
# --------------------------------------------------------------------------

def _reference_layer_norm(x, weight, bias, eps, data_format):
    if data_format == "channels_last":
        u = jnp.mean(x, axis=-1, keepdims=True)
        s = jnp.mean((x - u) ** 2, axis=-1, keepdims=True)
        return (x - u) / jnp.sqrt(s + eps) * weight + bias
    u = jnp.mean(x, axis=1, keepdims=True)
    s = jnp.mean((x - u) ** 2, axis=1, keepdims=True)
    xh = (x - u) / jnp.sqrt(s + eps)
    shape = (1, x.shape[1]) + (1,) * (x.ndim - 2)
    return weight.reshape(shape) * xh + bias.reshape(shape)


if __name__ == "__main__":
    key = jax.random.PRNGKey(0)
    k1, k2, k3, k4, k5, k6 = jax.random.split(key, 6)
    eps = 1e-5
    # MXU folded path is ~bf16x2 (hi/lo) accuracy, ~1e-6 relative; 1e-4 atol is ample.
    ATOL, RTOL = 1e-4, 1e-5

    # channels_last, C=32 -> lane-dense folded kernel (k=4, fw=128).
    C = 32
    weight = jax.random.normal(k1, (C,), dtype=jnp.float32)
    bias = jax.random.normal(k2, (C,), dtype=jnp.float32)
    x_last = jax.random.normal(k3, (2, 16, 16, C), dtype=jnp.float32)
    y_last = jax.block_until_ready(
        layer_norm(x_last, weight, bias, eps, data_format="channels_last"))
    ref_last = _reference_layer_norm(x_last, weight, bias, eps, "channels_last")
    assert jnp.allclose(y_last, ref_last, atol=ATOL, rtol=RTOL), "channels_last (folded) mismatch"

    # channels_first, (B, C, H, W) -> transpose-free sublane-reduction kernel.
    x_first = jax.random.normal(k4, (2, C, 16, 16), dtype=jnp.float32)
    y_first = jax.block_until_ready(
        layer_norm(x_first, weight, bias, eps, data_format="channels_first"))
    ref_first = _reference_layer_norm(x_first, weight, bias, eps, "channels_first")
    assert jnp.allclose(y_first, ref_first, atol=ATOL, rtol=RTOL), "channels_first mismatch"

    # channels_last, C=48 (awkward C, n % k != 0) -> generalized fold (k=8, fw=384)
    # for the bulk + general-kernel remainder, stitched together.
    C2 = 48
    w2 = jax.random.normal(k5, (C2,), dtype=jnp.float32)
    b2 = jnp.zeros((C2,), dtype=jnp.float32)
    x_gen = jax.random.normal(k6, (2, 7, C2), dtype=jnp.float32)
    y_gen = jax.block_until_ready(
        layer_norm(x_gen, w2, b2, eps, data_format="channels_last"))
    ref_gen = _reference_layer_norm(x_gen, w2, b2, eps, "channels_last")
    assert jnp.allclose(y_gen, ref_gen, atol=ATOL, rtol=RTOL), "channels_last (C=48) mismatch"

    # channels_last, C=256 (multiple of 128) -> MXU segmented-reduce kernel, k=1.
    C3 = 256
    w3 = jnp.ones((C3,), dtype=jnp.float32)
    b3 = jnp.zeros((C3,), dtype=jnp.float32)
    x_dense = jax.random.normal(k6, (4, 8, C3), dtype=jnp.float32)
    y_dense = jax.block_until_ready(
        layer_norm(x_dense, w3, b3, eps, data_format="channels_last"))
    ref_dense = _reference_layer_norm(x_dense, w3, b3, eps, "channels_last")
    assert jnp.allclose(y_dense, ref_dense, atol=ATOL, rtol=RTOL), "channels_last (C=256) mismatch"

    print("KERNEL_OK")
</pallas_src>

<mosaic_0001>
module attributes {stable_mosaic.version = 11 : i64} {
  func.func @_ln_folded_kernel(%arg0: i32, %arg1: memref<64x128xf32, #tpu.memory_space<vmem>>, %arg2: memref<1x128xf32, #tpu.memory_space<vmem>>, %arg3: memref<1x128xf32, #tpu.memory_space<vmem>>, %arg4: memref<128x128xbf16, #tpu.memory_space<vmem>>, %arg5: memref<64x128xf32, #tpu.memory_space<vmem>>) attributes {dimension_semantics = [#tpu.dimension_semantics<parallel>], iteration_bounds = array<i64: 2>, scalar_prefetch = 0 : i64, scratch_operands = 0 : i64, tpu.core_type = #tpu.core_type<tc>, window_params = [{transform_indices = @transform_0, window_bounds = array<i64: 64, 128>}, {pipeline_mode = #tpu.pipeline_mode<synchronous>, transform_indices = @transform_1, window_bounds = array<i64: 1, 128>}, {pipeline_mode = #tpu.pipeline_mode<synchronous>, transform_indices = @transform_2, window_bounds = array<i64: 1, 128>}, {pipeline_mode = #tpu.pipeline_mode<synchronous>, transform_indices = @transform_3, window_bounds = array<i64: 128, 128>}, {transform_indices = @transform_4, window_bounds = array<i64: 64, 128>}]} {
    %c0 = arith.constant 0 : index
    %c0_0 = arith.constant 0 : index
    %0 = vector.load %arg1[%c0, %c0_0] : memref<64x128xf32, #tpu.memory_space<vmem>>, vector<64x128xf32>
    %c0_1 = arith.constant 0 : index
    %c0_2 = arith.constant 0 : index
    %1 = vector.load %arg4[%c0_1, %c0_2] : memref<128x128xbf16, #tpu.memory_space<vmem>>, vector<128x128xbf16>
    %2 = arith.truncf %0 : vector<64x128xf32> to vector<64x128xbf16>
    %3 = arith.extf %2 : vector<64x128xbf16> to vector<64x128xf32>
    %4 = arith.subf %0, %3 : vector<64x128xf32>
    %5 = arith.truncf %4 : vector<64x128xf32> to vector<64x128xbf16>
    %cst = arith.constant dense<0.000000e+00> : vector<64x128xf32>
    %6 = tpu.matmul %2, %1, %cst {dimension_numbers = #tpu.dot_dimension_numbers<[1], [0], [0], [1], [0, 0, 1, 1], [], []>} : vector<64x128xbf16>, vector<128x128xbf16>, vector<64x128xf32> -> vector<64x128xf32>
    %cst_3 = arith.constant dense<0.000000e+00> : vector<64x128xf32>
    %7 = tpu.matmul %5, %1, %cst_3 {dimension_numbers = #tpu.dot_dimension_numbers<[1], [0], [0], [1], [0, 0, 1, 1], [], []>} : vector<64x128xbf16>, vector<128x128xbf16>, vector<64x128xf32> -> vector<64x128xf32>
    %8 = arith.addf %6, %7 : vector<64x128xf32>
    %cst_4 = arith.constant 3.125000e-02 : f32
    %9 = vector.broadcast %cst_4 : f32 to vector<64x128xf32>
    %10 = arith.mulf %8, %9 : vector<64x128xf32>
    %11 = arith.subf %0, %10 : vector<64x128xf32>
    %12 = arith.mulf %11, %11 : vector<64x128xf32>
    %13 = arith.truncf %12 : vector<64x128xf32> to vector<64x128xbf16>
    %14 = arith.extf %13 : vector<64x128xbf16> to vector<64x128xf32>
    %15 = arith.subf %12, %14 : vector<64x128xf32>
    %16 = arith.truncf %15 : vector<64x128xf32> to vector<64x128xbf16>
    %cst_5 = arith.constant dense<0.000000e+00> : vector<64x128xf32>
    %17 = tpu.matmul %13, %1, %cst_5 {dimension_numbers = #tpu.dot_dimension_numbers<[1], [0], [0], [1], [0, 0, 1, 1], [], []>} : vector<64x128xbf16>, vector<128x128xbf16>, vector<64x128xf32> -> vector<64x128xf32>
    %cst_6 = arith.constant dense<0.000000e+00> : vector<64x128xf32>
    %18 = tpu.matmul %16, %1, %cst_6 {dimension_numbers = #tpu.dot_dimension_numbers<[1], [0], [0], [1], [0, 0, 1, 1], [], []>} : vector<64x128xbf16>, vector<128x128xbf16>, vector<64x128xf32> -> vector<64x128xf32>
    %19 = arith.addf %17, %18 : vector<64x128xf32>
    %cst_7 = arith.constant 3.125000e-02 : f32
    %20 = vector.broadcast %cst_7 : f32 to vector<64x128xf32>
    %21 = arith.mulf %19, %20 : vector<64x128xf32>
    %cst_8 = arith.constant 9.99999974E-6 : f32
    %22 = vector.broadcast %cst_8 : f32 to vector<64x128xf32>
    %23 = arith.addf %21, %22 : vector<64x128xf32>
    %24 = math.rsqrt %23 : vector<64x128xf32>
    %25 = arith.mulf %11, %24 : vector<64x128xf32>
    %c0_9 = arith.constant 0 : index
    %c0_10 = arith.constant 0 : index
    %26 = vector.load %arg2[%c0_9, %c0_10] : memref<1x128xf32, #tpu.memory_space<vmem>>, vector<1x128xf32>
    %27 = vector.broadcast %26 : vector<1x128xf32> to vector<64x128xf32>
    %28 = arith.mulf %25, %27 : vector<64x128xf32>
    %c0_11 = arith.constant 0 : index
    %c0_12 = arith.constant 0 : index
    %29 = vector.load %arg3[%c0_11, %c0_12] : memref<1x128xf32, #tpu.memory_space<vmem>>, vector<1x128xf32>
    %30 = vector.broadcast %29 : vector<1x128xf32> to vector<64x128xf32>
    %31 = arith.addf %28, %30 : vector<64x128xf32>
    %c0_13 = arith.constant 0 : index
    %c0_14 = arith.constant 0 : index
    %32 = vector.load %arg5[%c0_13, %c0_14] : memref<64x128xf32, #tpu.memory_space<vmem>>, vector<64x128xf32>
    tpu.vector_store %arg5[%c0_13, %c0_14], %31 {strides = array<i32>} : memref<64x128xf32, #tpu.memory_space<vmem>>, vector<64x128xf32>,
    return
  }
  func.func @transform_0(%arg0: i32) -> (i32, i32) {
    %c0_i32 = arith.constant 0 : i32
    %c0_i32_0 = arith.constant 0 : i32
    return %arg0, %c0_i32 : i32, i32
  }
  func.func @transform_1(%arg0: i32) -> (i32, i32) {
    %c0_i32 = arith.constant 0 : i32
    %c0_i32_0 = arith.constant 0 : i32
    %c0_i32_1 = arith.constant 0 : i32
    return %c0_i32, %c0_i32_0 : i32, i32
  }
  func.func @transform_2(%arg0: i32) -> (i32, i32) {
    %c0_i32 = arith.constant 0 : i32
    %c0_i32_0 = arith.constant 0 : i32
    %c0_i32_1 = arith.constant 0 : i32
    return %c0_i32, %c0_i32_0 : i32, i32
  }
  func.func @transform_3(%arg0: i32) -> (i32, i32) {
    %c0_i32 = arith.constant 0 : i32
    %c0_i32_0 = arith.constant 0 : i32
    %c0_i32_1 = arith.constant 0 : i32
    return %c0_i32, %c0_i32_0 : i32, i32
  }
  func.func @transform_4(%arg0: i32) -> (i32, i32) {
    %c0_i32 = arith.constant 0 : i32
    %c0_i32_0 = arith.constant 0 : i32
    return %arg0, %c0_i32 : i32, i32
  }
}

</mosaic_0001>

<bundles_post_ra>
// kernel: tpu_custom_call.1
= control target key start
LH: loop header
LB: loop body
LE: loop exit
PB: predicated region body
PF: predicated region fallthrough
CT: control target
= control target key end

     0   :  { %9 = vsyncpa [#allocation3], 0  ;;  %s1570_s0 = inlined_call_operand.hbm [shape: f32[128,128], index: 0, kind: input, shape index: {}]   ;;  %s1571_s1 = inlined_call_operand.vmem [shape: f32[1,128], index: 1, kind: input, shape index: {}]   ;;  %s1572_s2 = inlined_call_operand.vmem [shape: f32[1,128], index: 2, kind: input, shape index: {}]   ;;  %s1573_s3 = inlined_call_operand.hbm [shape: bf16[128,128], index: 3, kind: input, shape index: {}]   ;;  %s1574_s4 = inlined_call_operand.hbm [shape: f32[128,128], index: 4, kind: output, shape index: {}]  }
   0x1   :  { %11 = vsyncpa [#allocation3 + $0x1], 0 }
   0x2   :  { %12 = vsyncpa [#allocation6], 0 }
   0x3   :  { %13 = vsyncpa [#allocation4], 0 }
   0x4   :  { %15 = vsyncpa [#allocation4 + $0x1], 0  ;;  %s1222_s15 = smov 0   ;;  %s1224_s16 = smov 0  }
   0x5   :  { %s1226_s17 = smov 0   ;;  %s1228_s18 = smov 0  }
   0x6 LB: > { %s1243_s19 = sadd.s32 4294967295, %s1186_s18   ;;  %s805_s20 = sadd.s32 4294967294, %s1186_s18   ;;  %s1186_s18 = sphi %s1228_s18, %s1596_s18   ;;  %s1182_s17 = sphi %s1226_s17, %s1595_s17   ;;  %s1178_s16 = sphi %s1224_s16, %s1594_s16   ;;  %s1174_s15 = sphi %s1222_s15, %s1593_s15  }
   0x7   : > { %p41_p0 = scmp.ne.s32.totalorder %s1178_s16, %s1174_s15  ;;  %p1575_p1 = scmp.eq.s32.totalorder %s1243_s19, 0 }
   0x8   : > { %p134_p3 = scmp.eq.s32.totalorder %s805_s20, 1  ;;  %p806_p5 = scmp.ge.s32.totalorder %s1186_s18, 1 }
   0x9   : > { %p1252_p4 = por %p1575_p1, %p41_p0  ;;  %p141_p7 = scmp.lt.s32.totalorder %s1186_s18, 3 }
   0xa   : > { %p1257_p6 = por %p134_p3, %p41_p0  ;;  %s1188_s24 = smov [#allocation5]  }
   0xb   : > { %s1579_s21 = scalar_select %p1252_p4, 1, 0 }
   0xc   : > { %s1580_s22 = scalar_select %p1257_p6, 1, 0 }
   0xd   : > { %p1262_p8 = pnand %p806_p5, %p141_p7  ;;  %s159_s25 = sshll.u32 %s1188_s24, 4  ;;  %s160_s25 = int_to_ptr.vmem [resolvable:$true] %s159_s25 }
   0xe   : > { %s1276_s27 = sadd.s32 1, %s1186_s18   ;;  %s28_s28 = sadd.s32 1, %s1182_s17 }
   0xf   : > { %s1581_s23 = scalar_select %p1262_p8, 1, 0 }
  0x10   : > { %p985_p9 = pneg %p1262_p8  ;;  %s25_s29 = ssub.s32 %s1186_s18, %s1276_s27 }
  0x11   : > { %s1075_s30 = scalar_lea.vmem %s160_s25, 1024  ;;  %p1083_p5 = scmp.lt.s32.totalorder %s160_s25, %s160_s25 }
  0x12   : > { %p1271_p11 = pnand %p985_p9, %p1575_p1  ;;  %p1076_p13 = scmp.ne.s32.totalorder %s160_s25, %s1075_s30 }
  0x13   : > { %p1084_p7 = scmp.lt.s32.totalorder %s1075_s30, %s1075_s30 }
  0x14   : > { %p1066_p12 = pneg %p1271_p11 }
  0x15   : > { %p1085_p10 = por %p1084_p7, %p1083_p5 }
  0x16   : > { %p1078_p0 = pnand %p1076_p13, %p1066_p12 }
  0x18   : > { %p1079_p3 = pneg %p1078_p0 }
  0x1a   : > { %p1086_p2 = pnand %p1085_p10, %p1079_p3 }
  0x1c   : > { %1089 = shalt.err (!%p1086_p2)
}
  0x1d   : > { %s1189_s5 = smov 64   ;;  %s1190_s6 = smov 4  }
  0x1e   : > { %988 = dma.hbm_to_vmem [thread:$0]  (!%p1271_p11), %s1573_s3, 1024, %s160_s25, [#allocation6], %s1189_s5, %s1189_s5, %s1190_s6  }
  0x1f   : > { %p26_p9 = scmp.eq.s32.totalorder %s25_s29, 0  ;;  %p35_p12 = scmp.ne.s32.totalorder %s1182_s17, %s1178_s16 }
  0x20   : > { %p36_p10 = scmp.eq.s32.totalorder %s1186_s18, 0  ;;  %p998_p2 = scmp.lt.s32.totalorder %s1186_s18, 2 }
  0x21   : > { %s1293_s9 = scalar_select %p26_p9, %s1182_s17, %s28_s28  }
  0x22   : > { %p37_p13 = por %p36_p10, %p35_p12  ;;  %p1583_p0 = scmp.eq.s32.totalorder %s1243_s19, 1 }
  0x23   : > { %s173_s11 = sand.u32 1, %s1182_s17   ;;  %s831_s12 = sshll.u32 %s1186_s18, 10 }
  0x24   : > { %p1297_p3 = por %p1583_p0, %p35_p12  ;;  %s809_s13 = sshll.u32 %s173_s11, 6 }
  0x25   : > { %s1306_s24 = scalar_lea.hbm %s1570_s0, %s831_s12  ;;  %s177_s25 = scalar_lea.vmem [#allocation2], %s809_s13 }
  0x26   : > { %s1584_s10 = scalar_select %p1297_p3, 1, 0 }
  0x27   : > { %s184_s26 = sshll.u32 %s177_s25, 4  ;;  %p1308_p11 = pnand %p998_p2, %p37_p13  ;;  %s1312_s26 = int_to_ptr.vmem [resolvable:$true] %s184_s26 }
  0x28   : > { %s1314_s29 = scalar_lea.sflag [#allocation3], %s173_s11  ;;  %s1090_s30 = scalar_lea.hbm %s1306_s24, 1024 }
  0x29   : > { %p1091_p5 = scmp.ne.s32.totalorder %s1306_s24, %s1090_s30  ;;  %p1092_p7 = pneg %p1308_p11 }
  0x2a   : > { %s1095_s7 = scalar_lea.hbm %s1570_s0, 2048  ;;  %p1096_p10 = scmp.lt.s32.totalorder %s1306_s24, %s1570_s0 }
  0x2b   : > { %p1093_p9 = pnand %p1092_p7, %p1091_p5  ;;  %p1097_p2 = scmp.lt.s32.totalorder %s1095_s7, %s1090_s30 }
  0x2d   : > { %p1094_p12 = pneg %p1093_p9  ;;  %p1098_p13 = por %p1097_p2, %p1096_p10 }
  0x2f   : > { %p1099_p0 = pnand %p1098_p13, %p1094_p12 }
  0x31   : > { %1102 = shalt.err (!%p1099_p0)
}
  0x32   : > { %s1103_s11 = scalar_lea.vmem %s1312_s26, 1024  ;;  %s1191_s13 = smov [#allocation2]  }
  0x33   : > { %p1104_p1 = scmp.ne.s32.totalorder %s1312_s26, %s1103_s11  ;;  %s1108_s14 = sshll.u32 %s1191_s13, 4  ;;  %s1109_s14 = int_to_ptr.vmem [resolvable:$false] %s1108_s14 }
  0x34   : > { %s1110_s20 = scalar_lea.vmem %s1109_s14, 2048  ;;  %p1111_p9 = scmp.lt.s32.totalorder %s1312_s26, %s1109_s14 }
  0x35   : > { %p1106_p6 = pnand %p1104_p1, %p1092_p7  ;;  %p1112_p3 = scmp.lt.s32.totalorder %s1110_s20, %s1103_s11 }
  0x37   : > { %p1107_p5 = pneg %p1106_p6  ;;  %p1113_p4 = por %p1112_p3, %p1111_p9 }
  0x39   : > { %p1114_p8 = pnand %p1113_p4, %p1107_p5 }
  0x3b   : > { %1117 = shalt.err (!%p1114_p8)
}
  0x3c   : > { %s1192_s25 = smov 128   ;;  %s1193_s30 = smov 8  }
  0x3d   : > { %992 = dma.hbm_to_vmem [thread:$0]  (!%p1308_p11), %s1306_s24, 1024, %s1312_s26, %s1314_s29, %s1192_s25, %s1192_s25, %s1193_s30  }
  0x3e   : > { %p1586_p1 = scmp.ne.s32.totalorder %s1581_s23, 0 }
  0x3f   : > { %s1338_s5 = sand.u32 (!%p1586_p1), 1, %s1178_s16   ;;  %p1587_p4 = scmp.ne.s32.totalorder (!%p1586_p1), %s1579_s21, 0 }
  0x40   : > { %196 = sbr.rel (%p1586_p1) target bundleno = 570 (0x23a), region = 36  ;;  %s813_s6 = sshll.u32 (!%p1586_p1), %s1338_s5, 6 }
  0x41   : > { %s199_s7 = scalar_lea.sflag (!%p1586_p1), [#allocation3], %s1338_s5  ;;  %s1344_s8 = scalar_lea.vmem (!%p1586_p1), [#allocation2], %s813_s6 }
  0x45   : > { %1161 = dma.done.wait (%p1587_p4), %s199_s7, 1024  }
  0x46   : > { %1163 = vsyncadd (%p1587_p4), %s199_s7, 4294966272  ;;  %p1588_p6 = scmp.eq.s32.totalorder %s1243_s19, 0 }
  0x48   : > { %1165 = dma.done.wait (%p1588_p6), [#allocation6], 1024   ;;  %p1589_p8 = pmov %p1588_p6 }
  0x49   : > { %v1354_v0 = vld [vmem:[#allocation5 + $0x38] sm:$0xff]   ;;  %v1356_v1 = vld [vmem:[#allocation5 + $0x30] sm:$0xff]   ;;  %v1364_v2 = vld [vmem:[#allocation5 + $0x28] sm:$0xff]   ;;  %s1505_s28 = scalar_lea.vmem [#allocation7], %s813_s6  ;;  %s832_s29 = sshll.u32 %s1243_s19, 10 }
  0x4a   : > { %1167 = vsyncadd (%p1589_p8), [#allocation6], 4294966272  ;;  %881 = vmatprep.subr.bf16.mxu0 %v1354_v0  ;;  %905 = vmatprep.subr.bf16.mxu1 %v1354_v0  ;;  %v1370_v3 = vld [vmem:[#allocation5 + $0x20] sm:$0xff]   ;;  %v1376_v5 = vld [vmem:[%s1344_s8 + $0x8] sm:$0xff]  ;;  %s722_s12 = sshll.u32 %s1505_s28, 4  ;;  %s1523_s14 = scalar_lea.hbm %s1574_s4, %s832_s29  ;;  %s1525_s12 = int_to_ptr.vmem [resolvable:$true] %s722_s12 }
  0x4b   : > { %882 = vmatpush3.bf16.msra.mxu0 %v1354_v0  ;;  %906 = vmatpush3.bf16.msra.mxu1 %v1354_v0  ;;  %v1373_v4 = vld [vmem:[%s1344_s8] sm:$0xff]  ;;  %v1384_v9 = vld [vmem:[#allocation5 + $0x18] sm:$0xff]   ;;  %v1391_v13 = vld [vmem:[%s1344_s8 + $0x10] sm:$0xff]  ;;  %s709_s20 = scalar_lea.sflag [#allocation4], %s1338_s5  ;;  %s1118_s25 = scalar_lea.vmem %s1525_s12, 1024 }
  0x4c   : > { %883 = vmatprep.subr.bf16.mxu0 %v1356_v1  ;;  %907 = vmatprep.subr.bf16.mxu1 %v1356_v1  ;;  %v258_v6 = vpack.c.bf16 %v1376_v5, %v1373_v4  ;;  %v1394_v14 = vld [vmem:[%s1344_s8 + $0x18] sm:$0xff]  ;;  %v1398_v15 = vld [vmem:[#allocation5 + $0x10] sm:$0xff]   ;;  %v1401_v16 = vld [vmem:[%s1344_s8 + $0x20] sm:$0xff]  ;;  %p1119_p3 = scmp.ne.s32.totalorder %s1525_s12, %s1118_s25  ;;  %p1590_p11 = scmp.ne.s32.totalorder %s1584_s10, 0 }
  0x4d   : > { %v1404_v17 = vld [vmem:[%s1344_s8 + $0x28] sm:$0xff]  ;;  %v259_v18 = vpack.c.bf16 %v1394_v14, %v1391_v13  ;;  %v1417_v25 = vld [vmem:[%s1344_s8 + $0x30] sm:$0xff]  ;;  %v1420_v26 = vld [vmem:[%s1344_s8 + $0x38] sm:$0xff]  ;;  %s1194_s19 = smov [#allocation7]  }
  0x4e   : > { %v262_v7 = vunpack.c.l.bf16 %v258_v6  ;;  %v263_v8 = vunpack.c.h.bf16 %v258_v6  ;;  %921 = vmatprep.mubr.bf16.mxu1 %v258_v6  ;;  %v260_v19 = vpack.c.bf16 %v1404_v17, %v1401_v16  ;;  %v1046_v20 = vld [vmem:[#allocation5 + $0x8] sm:$0xff]   ;;  %v1047_v27 = vld [vmem:[#allocation5] sm:$0xff]   ;;  %v261_v30 = vpack.c.bf16 %v1420_v26, %v1417_v25  ;;  %p1120_p7 = pnand %p1119_p3, %p1590_p11  ;;  %s1122_s30 = sshll.u32 %s1194_s19, 4  ;;  %s1123_s30 = int_to_ptr.vmem [resolvable:$false] %s1122_s30 }
  0x4f   : > { %884 = vmatpush3.bf16.msra.mxu0 %v1356_v1  ;;  %908 = vmatpush3.bf16.msra.mxu1 %v1356_v1  ;;  %v264_v21 = vunpack.c.l.bf16 %v259_v18  ;;  %v265_v22 = vunpack.c.h.bf16 %v259_v18  ;;  %s1124_s6 = scalar_lea.vmem %s1123_s30, 2048  ;;  %p1125_p10 = scmp.lt.s32.totalorder %s1525_s12, %s1123_s30 }
  0x50   : > { %885 = vmatprep.subr.bf16.mxu0 %v1364_v2  ;;  %909 = vmatprep.subr.bf16.mxu1 %v1364_v2  ;;  %v270_v10 = vsub.f32 %v1373_v4, %v262_v7  ;;  %v271_v11 = vsub.f32 %v1376_v5, %v263_v8  ;;  %v266_v23 = vunpack.c.l.bf16 %v260_v19  ;;  %v267_v24 = vunpack.c.h.bf16 %v260_v19  ;;  %p1121_p12 = pneg %p1120_p7  ;;  %p1126_p2 = scmp.lt.s32.totalorder %s1124_s6, %s1118_s25 }
  0x51   : > { %v272_v28 = vsub.f32 %v1391_v13, %v264_v21  ;;  %v273_v29 = vsub.f32 %v1394_v14, %v265_v22  ;;  %v268_v34 = vunpack.c.l.bf16 %v261_v30  ;;  %v269_v35 = vunpack.c.h.bf16 %v261_v30 }
  0x52   : > { %v278_v12 = vpack.c.bf16 %v271_v11, %v270_v10  ;;  %v274_v31 = vsub.f32 %v1401_v16, %v266_v23  ;;  %v275_v32 = vsub.f32 %v1404_v17, %v267_v24  ;;  %p1127_p13 = por %p1126_p2, %p1125_p10 }
  0x53   : > { %886 = vmatpush3.bf16.msra.mxu0 %v1364_v2  ;;  %910 = vmatpush3.bf16.msra.mxu1 %v1364_v2  ;;  %v279_v33 = vpack.c.bf16 %v273_v29, %v272_v28  ;;  %v276_v37 = vsub.f32 %v1417_v25, %v268_v34  ;;  %v277_v38 = vsub.f32 %v1420_v26, %v269_v35 }
  0x54   : > { %887 = vmatprep.subr.bf16.mxu0 %v1370_v3  ;;  %911 = vmatprep.subr.bf16.mxu1 %v1370_v3  ;;  %v280_v36 = vpack.c.bf16 %v275_v32, %v274_v31  ;;  %p1128_p0 = pnand %p1127_p13, %p1121_p12 }
  0x55   : > { %897 = vmatprep.mubr.bf16.mxu0 %v278_v12  ;;  %v281_v39 = vpack.c.bf16 %v277_v38, %v276_v37 }
  0x57   : > { %888 = vmatpush3.bf16.msra.mxu0 %v1370_v3  ;;  %912 = vmatpush3.bf16.msra.mxu1 %v1370_v3 }
  0x58   : > { %889 = vmatprep.subr.bf16.mxu0 %v1384_v9  ;;  %913 = vmatprep.subr.bf16.mxu1 %v1384_v9 }
  0x5b   : > { %890 = vmatpush3.bf16.msra.mxu0 %v1384_v9  ;;  %914 = vmatpush3.bf16.msra.mxu1 %v1384_v9 }
  0x5c   : > { %891 = vmatprep.subr.bf16.mxu0 %v1398_v15  ;;  %915 = vmatprep.subr.bf16.mxu1 %v1398_v15 }
  0x5f   : > { %892 = vmatpush3.bf16.msra.mxu0 %v1398_v15  ;;  %916 = vmatpush3.bf16.msra.mxu1 %v1398_v15 }
  0x60   : > { %893 = vmatprep.subr.bf16.mxu0 %v1046_v20  ;;  %917 = vmatprep.subr.bf16.mxu1 %v1046_v20 }
  0x63   : > { %894 = vmatpush3.bf16.msra.mxu0 %v1046_v20  ;;  %918 = vmatpush3.bf16.msra.mxu1 %v1046_v20 }
  0x64   : > { %895 = vmatprep.subr.bf16.mxu0 %v1047_v27  ;;  %919 = vmatprep.subr.bf16.mxu1 %v1047_v27 }
  0x67   : > { %896 = vmatpush3.bf16.msra.mxu0 %v1047_v27  ;;  %920 = vmatpush3.bf16.msra.mxu1 %v1047_v27 }
  0x68   : > { %953 = vmatprep.subr.bf16.mxu1 %v1354_v0  ;;  %929 = vmatprep.subr.bf16.mxu0 %v1354_v0 }
  0x6a   : > { %898 = vmatmul.mubr.bf16.vlgmr.msra.gmra.mxu0 %v279_v33  ;;  %922 = vmatmul.mubr.bf16.vlgmr.msra.gmra.mxu1 %v259_v18 }
  0x6b   : > { %901 = vmatprep.mubr.bf16.mxu0 %v280_v36  ;;  %925 = vmatprep.mubr.bf16.mxu1 %v260_v19 }
  0x6c   : > { %954 = vmatpush3.bf16.msra.mxu1 %v1354_v0  ;;  %930 = vmatpush3.bf16.msra.mxu0 %v1354_v0 }
  0x6d   : > { %955 = vmatprep.subr.bf16.mxu1 %v1356_v1  ;;  %931 = vmatprep.subr.bf16.mxu0 %v1356_v1 }
  0x70   : > { %956 = vmatpush3.bf16.msra.mxu1 %v1356_v1  ;;  %932 = vmatpush3.bf16.msra.mxu0 %v1356_v1 }
  0x71   : > { %957 = vmatprep.subr.bf16.mxu1 %v1364_v2  ;;  %933 = vmatprep.subr.bf16.mxu0 %v1364_v2 }
  0x72   : > { %902 = vmatmul.mubr.bf16.gmra.mxu0 %v281_v39  ;;  %926 = vmatmul.mubr.bf16.gmra.mxu1 %v261_v30 }
  0x74   : > { %958 = vmatpush3.bf16.msra.mxu1 %v1364_v2  ;;  %934 = vmatpush3.bf16.msra.mxu0 %v1364_v2 }
  0x75   : > { %959 = vmatprep.subr.bf16.mxu1 %v1370_v3  ;;  %935 = vmatprep.subr.bf16.mxu0 %v1370_v3 }
  0x78   : > { %960 = vmatpush3.bf16.msra.mxu1 %v1370_v3  ;;  %936 = vmatpush3.bf16.msra.mxu0 %v1370_v3 }
  0x79   : > { %961 = vmatprep.subr.bf16.mxu1 %v1384_v9  ;;  %937 = vmatprep.subr.bf16.mxu0 %v1384_v9 }
  0x7c   : > { %962 = vmatpush3.bf16.msra.mxu1 %v1384_v9  ;;  %938 = vmatpush3.bf16.msra.mxu0 %v1384_v9 }
  0x7d   : > { %963 = vmatprep.subr.bf16.mxu1 %v1398_v15  ;;  %939 = vmatprep.subr.bf16.mxu0 %v1398_v15 }
  0x80   : > { %964 = vmatpush3.bf16.msra.mxu1 %v1398_v15  ;;  %940 = vmatpush3.bf16.msra.mxu0 %v1398_v15 }
  0x81   : > { %965 = vmatprep.subr.bf16.mxu1 %v1046_v20  ;;  %941 = vmatprep.subr.bf16.mxu0 %v1046_v20 }
  0x84   : > { %966 = vmatpush3.bf16.msra.mxu1 %v1046_v20  ;;  %942 = vmatpush3.bf16.msra.mxu0 %v1046_v20 }
  0x85   : > { %967 = vmatprep.subr.bf16.mxu1 %v1047_v27  ;;  %943 = vmatprep.subr.bf16.mxu0 %v1047_v27 }
  0x88   : > { %968 = vmatpush3.bf16.msra.mxu1 %v1047_v27  ;;  %944 = vmatpush3.bf16.msra.mxu0 %v1047_v27 }
 0x12a   : > { %v899_v40 = vpop.f32.mrf.mxu0  ;;  %v923_v41 = vpop.f32.mrf.mxu1 }
 0x12b   : > { %v438_v42 = vadd.f32 %v923_v41, %v899_v40 }
 0x12c   : > { %v364_v43 = vpop.f32.mrf.mxu0  ;;  %v429_v44 = vpop.f32.mrf.mxu1 }
 0x12d   : > { %v462_v45 = vmul.f32 0.03125, %v438_v42  ;;  %v430_v46 = vadd.f32 %v429_v44, %v364_v43 }
 0x12e   : > { %v900_v47 = vpop.f32.mrf.mxu0  ;;  %v924_v48 = vpop.f32.mrf.mxu1 }
 0x12f   : > { %v441_v49 = vadd.f32 %v924_v48, %v900_v47  ;;  %v1455_v50 = vsub.f32 %v1391_v13, %v462_v45  ;;  %v460_v51 = vmul.f32 0.03125, %v430_v46 }
 0x130   : > { %v367_v52 = vpop.f32.mrf.mxu0  ;;  %v432_v53 = vpop.f32.mrf.mxu1 }
 0x131   : > { %v463_v54 = vmul.f32 0.03125, %v441_v49  ;;  %v433_v55 = vadd.f32 %v432_v53, %v367_v52  ;;  %v478_v61 = vmul.f32 %v1455_v50, %v1455_v50  ;;  %v1463_v62 = vsub.f32 %v1373_v4, %v460_v51 }
 0x132   : > { %v903_v56 = vpop.f32.mrf.mxu0  ;;  %v927_v57 = vpop.f32.mrf.mxu1 }
 0x133   : > { %v1458_v58 = vsub.f32 %v1394_v14, %v463_v54  ;;  %v461_v59 = vmul.f32 0.03125, %v433_v55  ;;  %v454_v60 = vadd.f32 %v927_v57, %v903_v56  ;;  %v476_v4 = vmul.f32 %v1463_v62, %v1463_v62 }
 0x134   : > { %v380_v63 = vpop.f32.mrf.mxu0  ;;  %v445_v0 = vpop.f32.mrf.mxu1 }
 0x135   : > { %v479_v1 = vmul.f32 %v1458_v58, %v1458_v58  ;;  %v1468_v2 = vsub.f32 %v1376_v5, %v461_v59  ;;  %v466_v3 = vmul.f32 0.03125, %v454_v60  ;;  %v446_v6 = vadd.f32 %v445_v0, %v380_v63 }
 0x136   : > { %v904_v7 = vpop.f32.mrf.mxu0  ;;  %v928_v8 = vpop.f32.mrf.mxu1 }
 0x137   : > { %v485_v9 = vpack.c.bf16 %v479_v1, %v478_v61  ;;  %v477_v10 = vmul.f32 %v1468_v2, %v1468_v2  ;;  %v464_v11 = vmul.f32 0.03125, %v446_v6  ;;  %v457_v12 = vadd.f32 %v928_v8, %v904_v7 }
 0x138   : > { %v383_v13 = vpop.f32.mrf.mxu0  ;;  %v448_v14 = vpop.f32.mrf.mxu1  ;;  %v1475_v5 = vsub.f32 %v1417_v25, %v466_v3 }
 0x139   : > { %v490_v15 = vunpack.c.l.bf16 %v485_v9  ;;  %v491_v18 = vunpack.c.h.bf16 %v485_v9  ;;  %v467_v19 = vmul.f32 0.03125, %v457_v12  ;;  %v449_v20 = vadd.f32 %v448_v14, %v383_v13 }
 0x13a   : > { %v484_v21 = vpack.c.bf16 %v477_v10, %v476_v4  ;;  %v1478_v22 = vsub.f32 %v1401_v16, %v464_v11  ;;  %v482_v31 = vmul.f32 %v1475_v5, %v1475_v5 }
 0x13b   : > { %v1481_v23 = vsub.f32 %v1420_v26, %v467_v19  ;;  %v465_v24 = vmul.f32 0.03125, %v449_v20  ;;  %v498_v29 = vsub.f32 %v478_v61, %v490_v15  ;;  %v499_v30 = vsub.f32 %v479_v1, %v491_v18 }
 0x13c   : > { %969 = vmatprep.mubr.bf16.mxu1 %v484_v21  ;;  %v488_v27 = vunpack.c.l.bf16 %v484_v21  ;;  %v489_v28 = vunpack.c.h.bf16 %v484_v21  ;;  %v480_v26 = vmul.f32 %v1478_v22, %v1478_v22 }
 0x13d   : > { %970 = vmatmul.mubr.bf16.vlgmr.msra.gmra.mxu1 %v485_v9  ;;  %v483_v25 = vmul.f32 %v1481_v23, %v1481_v23  ;;  %v1488_v32 = vsub.f32 %v1404_v17, %v465_v24  ;;  %v505_v37 = vpack.c.bf16 %v499_v30, %v498_v29 }
 0x13e   : > { %v496_v16 = vsub.f32 %v476_v4, %v488_v27  ;;  %v497_v33 = vsub.f32 %v477_v10, %v489_v28 }
 0x13f   : > { %v481_v34 = vmul.f32 %v1488_v32, %v1488_v32  ;;  %v487_v36 = vpack.c.bf16 %v483_v25, %v482_v31 }
 0x140   : > { %v504_v35 = vpack.c.bf16 %v497_v33, %v496_v16 }
 0x141   : > { %v486_v38 = vpack.c.bf16 %v481_v34, %v480_v26  ;;  %v494_v39 = vunpack.c.l.bf16 %v487_v36  ;;  %v495_v40 = vunpack.c.h.bf16 %v487_v36 }
 0x142   : > { %945 = vmatprep.mubr.bf16.mxu0 %v504_v35 }
 0x143   : > { %946 = vmatmul.mubr.bf16.vlgmr.msra.gmra.mxu0 %v505_v37  ;;  %973 = vmatprep.mubr.bf16.mxu1 %v486_v38  ;;  %v492_v41 = vunpack.c.l.bf16 %v486_v38  ;;  %v493_v17 = vunpack.c.h.bf16 %v486_v38  ;;  %v502_v42 = vsub.f32 %v482_v31, %v494_v39  ;;  %v503_v43 = vsub.f32 %v483_v25, %v495_v40  ;;  %v825_v37 = vld [vmem:[%s1572_s2] ss:$0 sm:$0xff] }
 0x145   : > { %974 = vmatmul.mubr.bf16.gmra.mxu1 %v487_v36  ;;  %v500_v44 = vsub.f32 %v480_v26, %v492_v41  ;;  %v501_v45 = vsub.f32 %v481_v34, %v493_v17  ;;  %v507_v47 = vpack.c.bf16 %v503_v43, %v502_v42  ;;  %v824_v34 = vld [vmem:[%s1571_s1] ss:$0 sm:$0xff] }
 0x147   : > { %v506_v46 = vpack.c.bf16 %v501_v45, %v500_v44 }
 0x149   : > { %949 = vmatprep.mubr.bf16.mxu0 %v506_v46 }
 0x14b   : > { %950 = vmatmul.mubr.bf16.gmra.mxu0 %v507_v47 }
 0x1fd   : > { %v971_v48 = vpop.f32.mrf.mxu1 }
 0x1ff   : > { %v607_v49 = vpop.f32.mrf.mxu1 }
 0x201   : > { %v972_v51 = vpop.f32.mrf.mxu1 }
 0x203   : > { %v947_v52 = vpop.f32.mrf.mxu0  ;;  %v610_v53 = vpop.f32.mrf.mxu1 }
 0x204   : > { %v616_v54 = vadd.f32 %v971_v48, %v947_v52 }
 0x205   : > { %v542_v55 = vpop.f32.mrf.mxu0  ;;  %v975_v56 = vpop.f32.mrf.mxu1 }
 0x206   : > { %v640_v57 = vmul.f32 0.03125, %v616_v54  ;;  %v608_v59 = vadd.f32 %v607_v49, %v542_v55 }
 0x207   : > { %v948_v60 = vpop.f32.mrf.mxu0  ;;  %v623_v1 = vpop.f32.mrf.mxu1 }
 0x208   : > { %v648_v61 = vadd.f32 1e-05, %v640_v57  ;;  %v638_v63 = vmul.f32 0.03125, %v608_v59  ;;  %v619_v0 = vadd.f32 %v972_v51, %v948_v60 }
 0x209   : > { %v545_v3 = vpop.f32.mrf.mxu0  ;;  %v976_v12 = vpop.f32.mrf.mxu1 }
 0x20a   : > { %1048 = vrsqrt.f32 %v648_v61  ;;  %v646_v6 = vadd.f32 1e-05, %v638_v63  ;;  %v641_v7 = vmul.f32 0.03125, %v619_v0  ;;  %v611_v8 = vadd.f32 %v610_v53, %v545_v3 }
 0x20b   : > { %v951_v9 = vpop.f32.mrf.mxu0  ;;  %v626_v27 = vpop.f32.mrf.mxu1 }
 0x20c   : > { %1050 = vrsqrt.f32 %v646_v6  ;;  %v649_v10 = vadd.f32 1e-05, %v641_v7  ;;  %v639_v11 = vmul.f32 0.03125, %v611_v8  ;;  %v632_v4 = vadd.f32 %v975_v56, %v951_v9 }
 0x20d   : > { %v558_v13 = vpop.f32.mrf.mxu0 }
 0x20e   : > { %1052 = vrsqrt.f32 %v649_v10  ;;  %v647_v14 = vadd.f32 1e-05, %v639_v11  ;;  %v644_v15 = vmul.f32 0.03125, %v632_v4  ;;  %v624_v18 = vadd.f32 %v623_v1, %v558_v13 }
 0x20f   : > { %v952_v19 = vpop.f32.mrf.mxu0 }
 0x210   : > { %1054 = vrsqrt.f32 %v647_v14  ;;  %v652_v20 = vadd.f32 1e-05, %v644_v15  ;;  %v642_v21 = vmul.f32 0.03125, %v624_v18  ;;  %v635_v24 = vadd.f32 %v976_v12, %v952_v19 }
 0x211   : > { %v561_v28 = vpop.f32.mrf.mxu0 }
 0x212   : > { %1056 = vrsqrt.f32 %v652_v20  ;;  %v650_v29 = vadd.f32 1e-05, %v642_v21  ;;  %v645_v30 = vmul.f32 0.03125, %v635_v24  ;;  %v627_v31 = vadd.f32 %v626_v27, %v561_v28 }
 0x214   : > { %1058 = vrsqrt.f32 %v650_v29  ;;  %v653_v25 = vadd.f32 1e-05, %v645_v30  ;;  %v643_v16 = vmul.f32 0.03125, %v627_v31 }
 0x216   : > { %1060 = vrsqrt.f32 %v653_v25  ;;  %v651_v33 = vadd.f32 1e-05, %v643_v16 }
 0x217   : > { %v1049_v26 = vpop.eup %1048 }
 0x218   : > { %v664_v35 = vmul.f32 %v1049_v26, %v1455_v50  ;;  %1062 = vrsqrt.f32 %v651_v33 }
 0x219   : > { %v1051_v36 = vpop.eup %1050 }
 0x21a   : > { %v679_v38 = vmul.f32 %v824_v34, %v664_v35  ;;  %v662_v39 = vmul.f32 %v1051_v36, %v1463_v62 }
 0x21b   : > { %v1053_v40 = vpop.eup %1052 }
 0x21c   : > { %v694_v41 = vadd.f32 %v825_v37, %v679_v38  ;;  %v677_v17 = vmul.f32 %v824_v34, %v662_v39  ;;  %v665_v42 = vmul.f32 %v1053_v40, %v1458_v58 }
 0x21d   : > { %v1055_v43 = vpop.eup %1054 }
 0x21e   : > { %702 = vst [vmem:[%s1505_s28 + $0x10] sm:$0xff] %v694_v41  ;;  %v692_v50 = vadd.f32 %v825_v37, %v677_v17  ;;  %v680_v44 = vmul.f32 %v824_v34, %v665_v42  ;;  %v663_v45 = vmul.f32 %v1055_v43, %v1468_v2 }
 0x21f   : > { %v1057_v46 = vpop.eup %1056 }
 0x220   : > { %700 = vst [vmem:[%s1505_s28] sm:$0xff] %v692_v50  ;;  %v695_v62 = vadd.f32 %v825_v37, %v680_v44  ;;  %v678_v47 = vmul.f32 %v824_v34, %v663_v45  ;;  %v668_v58 = vmul.f32 %v1057_v46, %v1475_v5 }
 0x221   : > { %v1059_v48 = vpop.eup %1058 }
 0x222   : > { %703 = vst [vmem:[%s1505_s28 + $0x18] sm:$0xff] %v695_v62  ;;  %v693_v49 = vadd.f32 %v825_v37, %v678_v47  ;;  %v683_v51 = vmul.f32 %v824_v34, %v668_v58  ;;  %v666_v52 = vmul.f32 %v1059_v48, %v1478_v22 }
 0x223   : > { %v1061_v53 = vpop.eup %1060 }
 0x224   : > { %701 = vst [vmem:[%s1505_s28 + $0x8] sm:$0xff] %v693_v49  ;;  %v698_v2 = vadd.f32 %v825_v37, %v683_v51  ;;  %v681_v54 = vmul.f32 %v824_v34, %v666_v52  ;;  %v669_v55 = vmul.f32 %v1061_v53, %v1481_v23 }
 0x225   : > { %v1063_v56 = vpop.eup %1062 }
 0x226   : > { %706 = vst [vmem:[%s1505_s28 + $0x30] sm:$0xff] %v698_v2  ;;  %v696_v5 = vadd.f32 %v825_v37, %v681_v54  ;;  %v684_v57 = vmul.f32 %v824_v34, %v669_v55  ;;  %v667_v59 = vmul.f32 %v1063_v56, %v1488_v32 }
 0x228   : > { %704 = vst [vmem:[%s1505_s28 + $0x20] sm:$0xff] %v696_v5  ;;  %v699_v22 = vadd.f32 %v825_v37, %v684_v57  ;;  %v682_v60 = vmul.f32 %v824_v34, %v667_v59 }
 0x22a   : > { %707 = vst [vmem:[%s1505_s28 + $0x38] sm:$0xff] %v699_v22  ;;  %v697_v23 = vadd.f32 %v825_v37, %v682_v60 }
 0x22c   : > { %705 = vst [vmem:[%s1505_s28 + $0x28] sm:$0xff] %v697_v23 }
 0x22d   : > { %1131 = shalt.err (!%p1128_p0)
}
 0x22e   : > { %s1132_s7 = scalar_lea.hbm %s1523_s14, 1024  ;;  %s1136_s23 = scalar_lea.hbm %s1574_s4, 2048 }
 0x22f   : > { %p1133_p5 = scmp.ne.s32.totalorder %s1523_s14, %s1132_s7  ;;  %p1137_p4 = scmp.lt.s32.totalorder %s1523_s14, %s1574_s4 }
 0x230   : > { %p1138_p6 = scmp.lt.s32.totalorder %s1136_s23, %s1132_s7 }
 0x231   : > { %p1134_p9 = pnand %p1133_p5, %p1590_p11 }
 0x232   : > { %p1139_p8 = por %p1138_p6, %p1137_p4 }
 0x233   : > { %p1135_p1 = pneg %p1134_p9 }
 0x235   : > { %p1140_p3 = pnand %p1139_p8, %p1135_p1 }
 0x237   : > { %1143 = shalt.err (!%p1140_p3)
}
 0x238   : > { %s1195_s28 = smov 128   ;;  %s1196_s29 = smov 8  }
 0x239   : > { %983 = dma.vmem_to_hbm [thread:$0]  (%p1590_p11), %s1525_s12, 1024, %s1523_s14, %s709_s20, %s1195_s28, %s1195_s28, %s1196_s29  }
 0x23a PF: > { %s737_s11 = sand.u32 1, %s1174_s15   ;;  %p1591_p7 = scmp.ne.s32.totalorder %s1580_s22, 0 }
 0x23b   : > { %p1592_p12 = scmp.ge.s32.totalorder %s1186_s18, 2  ;;  %s738_s13 = scalar_lea.sflag [#allocation4], %s737_s11 }
 0x23d   : > { %p994_p10 = pnand %p1592_p12, %p1591_p7 }
 0x23f   : > { %p995_p2 = pneg %p994_p10 }
 0x241   : > { %1169 = dma.done.wait (%p995_p2), %s738_s13, 1024  }
 0x242   : > { %1171 = vsyncadd (%p995_p2), %s738_s13, 4294966272  ;;  %p18_p13 = scmp.ge.s32.totalorder %s1276_s27, 4   ;;  %s1593_s15 = smov %s1178_s16 }
 0x243   : > { %s1594_s16 = smov %s1182_s17  ;;  %s1595_s17 = smov %s1293_s9 }
 0x244   : > { %s1596_s18 = smov %s1276_s27  ;;  %20 = sbr.rel (!%p18_p13) target bundleno = 6 (0x6), region = 85 }
 0x249   :  { %743 = vsyncpa [#allocation3], 1 }
 0x24a   :  { %745 = vsyncpa [#allocation3 + $0x1], 1 }
 0x24b   :  { %746 = vsyncpa [#allocation6], 1 }
 0x24c   :  { %747 = vsyncpa [#allocation4], 1 }
 0x24d   :  { %749 = vsyncpa [#allocation4 + $0x1], 1 }

</bundles_post_ra>
